<compile_context>
chip_gen: v7x
topology: tpu7x:2x2x1
jax: 0.10.0
libtpu: 0.0.40
codegen_flags: <defaults>
</compile_context>

<pallas_src>
import jax
import jax.numpy as jnp
from jax.experimental import pallas as pl
from jax.experimental.pallas import tpu as pltpu

INPUT_SIZE = 6
HIDDEN = 256
OUT = 2

K_PAD = 8       # padded input feature dim (sublane multiple)
N_OUT_PAD = 8   # padded output dim (kept tiny: minimizes HBM writeback bytes)


def _round_up(n, m):
    return (n + m - 1) // m * m


def _tpu_config():
    """Returns (tb_max, vmem_limit_bytes, tensorcores_per_chip) for this generation."""
    try:
        kind = jax.devices()[0].device_kind.lower()
    except Exception:  # pragma: no cover - defensive
        kind = ""
    if "v7" in kind:
        # 64 MiB physical VMEM per TC, 2 TCs/chip -> keep headroom, split grid.
        return 4096, 48 << 20, 2
    if "v6" in kind:
        return 4096, 64 << 20, 1
    if "v5" in kind:
        return 2048, 48 << 20, 1
    return 2048, 48 << 20, 1  # unknown: conservative


def mlp_kernel(x_ref, w1_ref, b1_ref, w2_ref, b2_ref, w3_ref, b3_ref, o_ref):
    # Layer 1: (TB,8)bf16 @ (8,256)bf16 -> f32 acc, + bias, ReLU (VPU, fused)
    h1 = jnp.dot(x_ref[...], w1_ref[...], preferred_element_type=jnp.float32)
    h1 = jnp.maximum(h1 + b1_ref[...], 0.0)
    # Layer 2: (TB,256)bf16 @ (256,256)bf16 -> f32 acc, + bias, ReLU
    h2 = jnp.dot(h1.astype(jnp.bfloat16), w2_ref[...],
                 preferred_element_type=jnp.float32)
    h2 = jnp.maximum(h2 + b2_ref[...], 0.0)
    # Layer 3: (TB,256)bf16 @ (256,8)bf16 -> f32 acc, + bias (cols >= OUT are zero)
    y = jnp.dot(h2.astype(jnp.bfloat16), w3_ref[...],
                preferred_element_type=jnp.float32) + b3_ref[...]
    o_ref[...] = y.astype(o_ref.dtype)   # narrow (TB, 8) store: 32 B/row writeback


def prepare_params(params):
    """One-time padding / bf16 casting of weights. Call once, reuse per forward."""
    w1, b1, w2, b2, w3, b3 = params
    w1_p = jnp.zeros((K_PAD, HIDDEN), jnp.bfloat16)
    w1_p = w1_p.at[:INPUT_SIZE, :].set(w1.astype(jnp.bfloat16))
    b1_p = jnp.asarray(b1, jnp.float32).reshape(1, HIDDEN)
    w2_p = w2.astype(jnp.bfloat16)
    b2_p = jnp.asarray(b2, jnp.float32).reshape(1, HIDDEN)
    w3_p = jnp.zeros((HIDDEN, N_OUT_PAD), jnp.bfloat16)
    w3_p = w3_p.at[:, :OUT].set(w3.astype(jnp.bfloat16))
    b3_p = jnp.zeros((1, N_OUT_PAD), jnp.float32)
    b3_p = b3_p.at[:, :OUT].set(jnp.asarray(b3, jnp.float32).reshape(1, OUT))
    return (w1_p, b1_p, w2_p, b2_p, w3_p, b3_p)


def generator_forward(x, prepared_params, tb=None):
    """x: (B, 6) f32, prepared_params from prepare_params(). Returns (B, 2) f32."""
    w1_p, b1_p, w2_p, b2_p, w3_p, b3_p = prepared_params
    B = x.shape[0]
    tb_max, vmem_limit, num_cores = _tpu_config()

    rows = _round_up(max(B, 1), 8)
    if tb is None:
        tb = min(tb_max, rows)
        # On multi-TC chips (v7x), keep >=2 grid steps for mid-size batches so the
        # "parallel" batch axis actually lands on both TensorCores.
        if num_cores > 1 and rows > 8 and rows <= tb_max:
            tb = max(8, _round_up((rows + 1) // 2, 8))
    tb = _round_up(min(tb, tb_max), 8)
    b_pad = _round_up(rows, tb)

    # Only x padding is per-call (padded rows produce garbage that is sliced away).
    x_p = jnp.zeros((b_pad, K_PAD), jnp.bfloat16)
    x_p = x_p.at[:B, :INPUT_SIZE].set(x.astype(jnp.bfloat16))

    grid = (b_pad // tb,)

    out = pl.pallas_call(
        mlp_kernel,
        out_shape=jax.ShapeDtypeStruct((b_pad, N_OUT_PAD), jnp.float32),
        grid_spec=pltpu.PrefetchScalarGridSpec(
            num_scalar_prefetch=0,
            grid=grid,
            in_specs=[
                pl.BlockSpec((tb, K_PAD), lambda i: (i, 0)),           # x: batch-tiled
                pl.BlockSpec((K_PAD, HIDDEN), lambda i: (0, 0)),       # w1: resident
                pl.BlockSpec((1, HIDDEN), lambda i: (0, 0)),           # b1: resident
                pl.BlockSpec((HIDDEN, HIDDEN), lambda i: (0, 0)),      # w2: resident
                pl.BlockSpec((1, HIDDEN), lambda i: (0, 0)),           # b2: resident
                pl.BlockSpec((HIDDEN, N_OUT_PAD), lambda i: (0, 0)),   # w3: resident
                pl.BlockSpec((1, N_OUT_PAD), lambda i: (0, 0)),        # b3: resident
            ],
            out_specs=pl.BlockSpec((tb, N_OUT_PAD), lambda i: (i, 0)),  # out: batch-tiled
        ),
        compiler_params=pltpu.CompilerParams(
            dimension_semantics=("parallel",),   # megacore sharding on v7x
            vmem_limit_bytes=vmem_limit,
        ),
    )(x_p, w1_p, b1_p, w2_p, b2_p, w3_p, b3_p)

    return out[:B, :OUT]


def init_params(key):
    """Deterministic init mimicking PyTorch nn.Linear default:
    U(-1/sqrt(fan_in), 1/sqrt(fan_in)) for both weights and biases."""
    ks = jax.random.split(key, 6)

    def lin(kw, kb, fan_in, fan_out):
        bound = 1.0 / jnp.sqrt(float(fan_in))
        w = jax.random.uniform(kw, (fan_in, fan_out), jnp.float32, -bound, bound)
        b = jax.random.uniform(kb, (1, fan_out), jnp.float32, -bound, bound)
        return w, b

    w1, b1 = lin(ks[0], ks[1], INPUT_SIZE, HIDDEN)
    w2, b2 = lin(ks[2], ks[3], HIDDEN, HIDDEN)
    w3, b3 = lin(ks[4], ks[5], HIDDEN, OUT)
    return (w1, b1, w2, b2, w3, b3)


def reference_forward_f32(x, params):
    w1, b1, w2, b2, w3, b3 = params
    h1 = jnp.maximum(x @ w1 + b1, 0.0)
    h2 = jnp.maximum(h1 @ w2 + b2, 0.0)
    return h2 @ w3 + b3


def reference_forward_bf16(x, params):
    """Emulates the kernel's bf16-operand / f32-accumulation numerics."""
    w1, b1, w2, b2, w3, b3 = params
    h1 = jnp.dot(x.astype(jnp.bfloat16), w1.astype(jnp.bfloat16),
                 preferred_element_type=jnp.float32)
    h1 = jnp.maximum(h1 + b1, 0.0)
    h2 = jnp.dot(h1.astype(jnp.bfloat16), w2.astype(jnp.bfloat16),
                 preferred_element_type=jnp.float32)
    h2 = jnp.maximum(h2 + b2, 0.0)
    return jnp.dot(h2.astype(jnp.bfloat16), w3.astype(jnp.bfloat16),
                   preferred_element_type=jnp.float32) + b3


if __name__ == "__main__":
    key = jax.random.PRNGKey(0)
    k_params, k_x1, k_x2 = jax.random.split(key, 3)
    params = init_params(k_params)
    prepared = prepare_params(params)   # one-time padding/cast (hoisted out of forward)

    # Small batch (exercises tb < tb_max / single grid step path).
    B1 = 8
    x1 = jax.random.normal(k_x1, (B1, INPUT_SIZE), dtype=jnp.float32)
    out1 = jax.block_until_ready(generator_forward(x1, prepared))
    assert out1.shape == (B1, OUT)
    ref1 = reference_forward_bf16(x1, params)
    assert jnp.allclose(out1, ref1, atol=5e-3, rtol=5e-3)
    # Sanity vs. pure-f32 semantics (loose: bf16 MXU inputs, f32 accumulation).
    assert jnp.allclose(out1, reference_forward_f32(x1, params), atol=0.15, rtol=0.15)

    # Larger ragged batch, explicit small tile -> multi-step grid + row-padding path.
    B2 = 1000
    x2 = jax.random.normal(k_x2, (B2, INPUT_SIZE), dtype=jnp.float32)
    ref2 = reference_forward_bf16(x2, params)

    out2a = jax.block_until_ready(generator_forward(x2, prepared, tb=256))
    assert out2a.shape == (B2, OUT)
    assert jnp.allclose(out2a, ref2, atol=5e-3, rtol=5e-3)

    # Same batch with the default (generation-aware) tile selection.
    out2b = jax.block_until_ready(generator_forward(x2, prepared))
    assert out2b.shape == (B2, OUT)
    assert jnp.allclose(out2b, ref2, atol=5e-3, rtol=5e-3)

    print("KERNEL_OK")
</pallas_src>

<mosaic_0001>
module attributes {stable_mosaic.version = 11 : i64} {
  func.func @mlp_kernel(%arg0: i32, %arg1: memref<8x8xbf16, #tpu.memory_space<vmem>>, %arg2: memref<8x256xbf16, #tpu.memory_space<vmem>>, %arg3: memref<1x256xf32, #tpu.memory_space<vmem>>, %arg4: memref<256x256xbf16, #tpu.memory_space<vmem>>, %arg5: memref<1x256xf32, #tpu.memory_space<vmem>>, %arg6: memref<256x8xbf16, #tpu.memory_space<vmem>>, %arg7: memref<1x8xf32, #tpu.memory_space<vmem>>, %arg8: memref<8x8xf32, #tpu.memory_space<vmem>>) attributes {dimension_semantics = [#tpu.dimension_semantics<parallel>], iteration_bounds = array<i64: 1>, scalar_prefetch = 0 : i64, scratch_operands = 0 : i64, tpu.core_type = #tpu.core_type<tc>, window_params = [{transform_indices = @transform_0, window_bounds = array<i64: 8, 8>}, {pipeline_mode = #tpu.pipeline_mode<synchronous>, transform_indices = @transform_1, window_bounds = array<i64: 8, 256>}, {pipeline_mode = #tpu.pipeline_mode<synchronous>, transform_indices = @transform_2, window_bounds = array<i64: 1, 256>}, {pipeline_mode = #tpu.pipeline_mode<synchronous>, transform_indices = @transform_3, window_bounds = array<i64: 256, 256>}, {pipeline_mode = #tpu.pipeline_mode<synchronous>, transform_indices = @transform_4, window_bounds = array<i64: 1, 256>}, {pipeline_mode = #tpu.pipeline_mode<synchronous>, transform_indices = @transform_5, window_bounds = array<i64: 256, 8>}, {pipeline_mode = #tpu.pipeline_mode<synchronous>, transform_indices = @transform_6, window_bounds = array<i64: 1, 8>}, {transform_indices = @transform_7, window_bounds = array<i64: 8, 8>}]} {
    %c0 = arith.constant 0 : index
    %c0_0 = arith.constant 0 : index
    %0 = vector.load %arg1[%c0, %c0_0] : memref<8x8xbf16, #tpu.memory_space<vmem>>, vector<8x8xbf16>
    %c0_1 = arith.constant 0 : index
    %c0_2 = arith.constant 0 : index
    %1 = vector.load %arg2[%c0_1, %c0_2] : memref<8x256xbf16, #tpu.memory_space<vmem>>, vector<8x256xbf16>
    %cst = arith.constant dense<0.000000e+00> : vector<8x256xf32>
    %2 = tpu.matmul %0, %1, %cst {dimension_numbers = #tpu.dot_dimension_numbers<[1], [0], [0], [1], [0, 0, 1, 1], [], []>} : vector<8x8xbf16>, vector<8x256xbf16>, vector<8x256xf32> -> vector<8x256xf32>
    %c0_3 = arith.constant 0 : index
    %c0_4 = arith.constant 0 : index
    %3 = vector.load %arg3[%c0_3, %c0_4] : memref<1x256xf32, #tpu.memory_space<vmem>>, vector<1x256xf32>
    %4 = vector.broadcast %3 : vector<1x256xf32> to vector<8x256xf32>
    %5 = arith.addf %2, %4 : vector<8x256xf32>
    %cst_5 = arith.constant 0.000000e+00 : f32
    %6 = vector.broadcast %cst_5 : f32 to vector<8x256xf32>
    %7 = arith.maximumf %5, %6 : vector<8x256xf32>
    %8 = arith.truncf %7 : vector<8x256xf32> to vector<8x256xbf16>
    %c0_6 = arith.constant 0 : index
    %c0_7 = arith.constant 0 : index
    %9 = vector.load %arg4[%c0_6, %c0_7] : memref<256x256xbf16, #tpu.memory_space<vmem>>, vector<256x256xbf16>
    %cst_8 = arith.constant dense<0.000000e+00> : vector<8x256xf32>
    %10 = tpu.matmul %8, %9, %cst_8 {dimension_numbers = #tpu.dot_dimension_numbers<[1], [0], [0], [1], [0, 0, 1, 1], [], []>} : vector<8x256xbf16>, vector<256x256xbf16>, vector<8x256xf32> -> vector<8x256xf32>
    %c0_9 = arith.constant 0 : index
    %c0_10 = arith.constant 0 : index
    %11 = vector.load %arg5[%c0_9, %c0_10] : memref<1x256xf32, #tpu.memory_space<vmem>>, vector<1x256xf32>
    %12 = vector.broadcast %11 : vector<1x256xf32> to vector<8x256xf32>
    %13 = arith.addf %10, %12 : vector<8x256xf32>
    %cst_11 = arith.constant 0.000000e+00 : f32
    %14 = vector.broadcast %cst_11 : f32 to vector<8x256xf32>
    %15 = arith.maximumf %13, %14 : vector<8x256xf32>
    %16 = arith.truncf %15 : vector<8x256xf32> to vector<8x256xbf16>
    %c0_12 = arith.constant 0 : index
    %c0_13 = arith.constant 0 : index
    %17 = vector.load %arg6[%c0_12, %c0_13] : memref<256x8xbf16, #tpu.memory_space<vmem>>, vector<256x8xbf16>
    %cst_14 = arith.constant dense<0.000000e+00> : vector<8x8xf32>
    %18 = tpu.matmul %16, %17, %cst_14 {dimension_numbers = #tpu.dot_dimension_numbers<[1], [0], [0], [1], [0, 0, 1, 1], [], []>} : vector<8x256xbf16>, vector<256x8xbf16>, vector<8x8xf32> -> vector<8x8xf32>
    %c0_15 = arith.constant 0 : index
    %c0_16 = arith.constant 0 : index
    %19 = vector.load %arg7[%c0_15, %c0_16] : memref<1x8xf32, #tpu.memory_space<vmem>>, vector<1x8xf32>
    %20 = vector.broadcast %19 : vector<1x8xf32> to vector<8x8xf32>
    %21 = arith.addf %18, %20 : vector<8x8xf32>
    %c0_17 = arith.constant 0 : index
    %c0_18 = arith.constant 0 : index
    %22 = vector.load %arg8[%c0_17, %c0_18] : memref<8x8xf32, #tpu.memory_space<vmem>>, vector<8x8xf32>
    tpu.vector_store %arg8[%c0_17, %c0_18], %21 {strides = array<i32>} : memref<8x8xf32, #tpu.memory_space<vmem>>, vector<8x8xf32>,
    return
  }
  func.func @transform_0(%arg0: i32) -> (i32, i32) {
    %c0_i32 = arith.constant 0 : i32
    %c0_i32_0 = arith.constant 0 : i32
    return %arg0, %c0_i32 : i32, i32
  }
  func.func @transform_1(%arg0: i32) -> (i32, i32) {
    %c0_i32 = arith.constant 0 : i32
    %c0_i32_0 = arith.constant 0 : i32
    %c0_i32_1 = arith.constant 0 : i32
    return %c0_i32, %c0_i32_0 : i32, i32
  }
  func.func @transform_2(%arg0: i32) -> (i32, i32) {
    %c0_i32 = arith.constant 0 : i32
    %c0_i32_0 = arith.constant 0 : i32
    %c0_i32_1 = arith.constant 0 : i32
    return %c0_i32, %c0_i32_0 : i32, i32
  }
  func.func @transform_3(%arg0: i32) -> (i32, i32) {
    %c0_i32 = arith.constant 0 : i32
    %c0_i32_0 = arith.constant 0 : i32
    %c0_i32_1 = arith.constant 0 : i32
    return %c0_i32, %c0_i32_0 : i32, i32
  }
  func.func @transform_4(%arg0: i32) -> (i32, i32) {
    %c0_i32 = arith.constant 0 : i32
    %c0_i32_0 = arith.constant 0 : i32
    %c0_i32_1 = arith.constant 0 : i32
    return %c0_i32, %c0_i32_0 : i32, i32
  }
  func.func @transform_5(%arg0: i32) -> (i32, i32) {
    %c0_i32 = arith.constant 0 : i32
    %c0_i32_0 = arith.constant 0 : i32
    %c0_i32_1 = arith.constant 0 : i32
    return %c0_i32, %c0_i32_0 : i32, i32
  }
  func.func @transform_6(%arg0: i32) -> (i32, i32) {
    %c0_i32 = arith.constant 0 : i32
    %c0_i32_0 = arith.constant 0 : i32
    %c0_i32_1 = arith.constant 0 : i32
    return %c0_i32, %c0_i32_0 : i32, i32
  }
  func.func @transform_7(%arg0: i32) -> (i32, i32) {
    %c0_i32 = arith.constant 0 : i32
    %c0_i32_0 = arith.constant 0 : i32
    return %arg0, %c0_i32 : i32, i32
  }
}

</mosaic_0001>

<bundles_post_ra>
// kernel: tpu_custom_call.1
= control target key start
LH: loop header
LB: loop body
LE: loop exit
PB: predicated region body
PF: predicated region fallthrough
CT: control target
= control target key end

     0   :  { %12 = vsyncpa [#allocation3], 0  ;;  %s885_s0 = inlined_call_operand.vmem [shape: bf16[8,8], index: 0, kind: input, shape index: {}]   ;;  %s886_s1 = inlined_call_operand.vmem [shape: bf16[8,256], index: 1, kind: input, shape index: {}]   ;;  %s887_s2 = inlined_call_operand.vmem [shape: f32[1,256], index: 2, kind: input, shape index: {}]   ;;  %s888_s3 = inlined_call_operand.hbm [shape: bf16[256,256], index: 3, kind: input, shape index: {}]   ;;  %s889_s4 = inlined_call_operand.vmem [shape: f32[1,256], index: 4, kind: input, shape index: {}]   ;;  %s890_s5 = inlined_call_operand.vmem [shape: bf16[256,8], index: 5, kind: input, shape index: {}]   ;;  %s891_s6 = inlined_call_operand.vmem [shape: f32[1,8], index: 6, kind: input, shape index: {}]   ;;  %s892_s7 = inlined_call_operand.hbm [shape: f32[8,8], index: 7, kind: output, shape index: {}]  }
   0x1   :  { %13 = vsyncpa [#allocation4], 0  ;;  %s751_s24 = smov [#allocation2]   ;;  %s703_s28 = scalar_lea.hbm %s888_s3, 4096 }
   0x2   :  { %s25_s25 = sshll.u32 %s751_s24, 4  ;;  %p704_p0 = scmp.ne.s32.totalorder %s888_s3, %s703_s28  ;;  %s26_s25 = int_to_ptr.vmem [resolvable:$true] %s25_s25 }
   0x3   :  { %p707_p1 = scmp.lt.u32.totalorder %s703_s28, %s888_s3 }
   0x5   :  { %p709_p2 = pnand %p707_p1, %p704_p0 }
   0x7   :  { %712 = shalt.err (!%p709_p2)
}
   0x8   :  { %s713_s10 = scalar_lea.vmem %s26_s25, 4096  ;;  %p718_p4 = scmp.lt.s32.totalorder %s26_s25, %s26_s25 }
   0x9   :  { %p714_p3 = scmp.ne.s32.totalorder %s26_s25, %s713_s10  ;;  %p719_p5 = scmp.lt.s32.totalorder %s713_s10, %s713_s10 }
   0xb   :  { %p720_p6 = por %p719_p5, %p718_p4 }
   0xd   :  { %p721_p7 = pnand %p720_p6, %p714_p3 }
   0xf   :  { %724 = shalt.err (!%p721_p7)
}
  0x10   :  { %s752_s11 = smov 128   ;;  %s753_s12 = smov 8  }
  0x11   :  { %31 = dma.hbm_to_vmem [thread:$0]  %s888_s3, 4096, %s26_s25, [#allocation3], %s752_s11, %s752_s11, %s753_s12  }
  0x12   :  { %747 = dma.done.wait [#allocation3], 4096  }
  0x13   :  { %748 = vsyncadd [#allocation3], 4294963200  ;;  %v754_v0 = vmov 0   ;;  %v43_v1 = vld [vmem:[%s886_s1] sm:$0xff]  ;;  %vm65_vm0 = vcmask 1043456   ;;  %vm61_vm1 = vcmask 64512   ;;  %v46_v50 = vlaneseq }
  0x14   :  { %104 = vmatprep.mubr.bf16.mxu0 %v754_v0  ;;  %v558_v2 = vcombine.high %v43_v1, %v43_v1  ;;  %v557_v3 = vcombine.low %v43_v1, %v43_v1  ;;  %v639_v4 = vld [vmem:[#allocation2 + $0x4] ss:$8 sps:$4 sm:$0xff]   ;;  %v641_v5 = vld [vmem:[#allocation2] ss:$8 sps:$4 sm:$0xff]   ;;  %v642_v6 = vld [vmem:[#allocation2 + $0x14] ss:$8 sps:$4 sm:$0xff]  }
  0x15   :  { %321 = vmatprep.subr.bf16.mxu1 %v639_v4  ;;  %v42_v8 = vld [vmem:[%s885_s0] sm:$0xf]  ;;  %v644_v9 = vld [vmem:[#allocation2 + $0x10] ss:$8 sps:$4 sm:$0xff]   ;;  %v645_v10 = vld [vmem:[#allocation2 + $0x24] ss:$8 sps:$4 sm:$0xff]  }
  0x16   :  { %559 = vmatprep.subr.msk.bf16.mxu0 %vm65_vm0, %v558_v2  ;;  %v67_v7 = vsel %vm65_vm0, %v557_v3, 0  ;;  %322 = vmatpush1.bf16.msra.mxu1 %v641_v5  ;;  %v647_v11 = vld [vmem:[#allocation2 + $0x20] ss:$8 sps:$4 sm:$0xff]   ;;  %v648_v12 = vld [vmem:[#allocation2 + $0x34] ss:$8 sps:$4 sm:$0xff]   ;;  %v47_v51 = vshrl.u32 %v46_v50, 7 }
  0x17   :  { %73 = vmatpush1.bf16.msra.mxu0 %v67_v7  ;;  %323 = vmatprep.subr.bf16.mxu1 %v642_v6  ;;  %v650_v13 = vld [vmem:[#allocation2 + $0x30] ss:$8 sps:$4 sm:$0xff]   ;;  %v651_v14 = vld [vmem:[#allocation2 + $0x44] ss:$8 sps:$4 sm:$0xff]   ;;  %v653_v15 = vld [vmem:[#allocation2 + $0x40] ss:$8 sps:$4 sm:$0xff]  }
  0x18   :  { %v654_v16 = vld [vmem:[#allocation2 + $0x54] ss:$8 sps:$4 sm:$0xff]   ;;  %v656_v17 = vld [vmem:[#allocation2 + $0x50] ss:$8 sps:$4 sm:$0xff]   ;;  %v657_v18 = vld [vmem:[#allocation2 + $0x64] ss:$8 sps:$4 sm:$0xff]  }
  0x19   :  { %v659_v19 = vld [vmem:[#allocation2 + $0x60] ss:$8 sps:$4 sm:$0xff]   ;;  %v660_v20 = vld [vmem:[#allocation2 + $0x74] ss:$8 sps:$4 sm:$0xff]   ;;  %v662_v21 = vld [vmem:[#allocation2 + $0x70] ss:$8 sps:$4 sm:$0xff]  }
  0x1a   :  { %560 = vmatmul.mubr.msk.bf16.vlgmr.msra.gmra.mrb[0].mxu0 %vm61_vm1, %v42_v8  ;;  %324 = vmatpush1.bf16.msra.mxu1 %v644_v9  ;;  %v663_v22 = vld [vmem:[#allocation2 + $0x84] ss:$8 sps:$4 sm:$0xff]   ;;  %v665_v23 = vld [vmem:[#allocation2 + $0x80] ss:$8 sps:$4 sm:$0xff]   ;;  %v666_v24 = vld [vmem:[#allocation2 + $0x94] ss:$8 sps:$4 sm:$0xff]  }
  0x1b   :  { %325 = vmatprep.subr.bf16.mxu1 %v645_v10  ;;  %v668_v25 = vld [vmem:[#allocation2 + $0x90] ss:$8 sps:$4 sm:$0xff]   ;;  %v669_v26 = vld [vmem:[#allocation2 + $0xa4] ss:$8 sps:$4 sm:$0xff]   ;;  %v671_v27 = vld [vmem:[#allocation2 + $0xa0] ss:$8 sps:$4 sm:$0xff]  }
  0x1c   :  { %v672_v28 = vld [vmem:[#allocation2 + $0xb4] ss:$8 sps:$4 sm:$0xff]   ;;  %v674_v29 = vld [vmem:[#allocation2 + $0xb0] ss:$8 sps:$4 sm:$0xff]   ;;  %v675_v30 = vld [vmem:[#allocation2 + $0xc4] ss:$8 sps:$4 sm:$0xff]  }
  0x1d   :  { %v677_v31 = vld [vmem:[#allocation2 + $0xc0] ss:$8 sps:$4 sm:$0xff]   ;;  %v678_v32 = vld [vmem:[#allocation2 + $0xd4] ss:$8 sps:$4 sm:$0xff]   ;;  %v680_v33 = vld [vmem:[#allocation2 + $0xd0] ss:$8 sps:$4 sm:$0xff]  }
  0x1e   :  { %326 = vmatpush1.bf16.msra.mxu1 %v647_v11  ;;  %v681_v34 = vld [vmem:[#allocation2 + $0xe4] ss:$8 sps:$4 sm:$0xff]   ;;  %v683_v35 = vld [vmem:[#allocation2 + $0xe0] ss:$8 sps:$4 sm:$0xff]   ;;  %v684_v36 = vld [vmem:[#allocation2 + $0xf4] ss:$8 sps:$4 sm:$0xff]  }
  0x1f   :  { %327 = vmatprep.subr.bf16.mxu1 %v648_v12  ;;  %v686_v37 = vld [vmem:[#allocation2 + $0xf0] ss:$8 sps:$4 sm:$0xff]   ;;  %v687_v38 = vld [vmem:[%s890_s5 + $0x40] sm:$0xff]   ;;  %v689_v40 = vld [vmem:[%s890_s5 + $0x48] sm:$0xff]   ;;  %v48_v52 = vsub.s32 0, %v47_v51  ;;  %v52_v54 = vsub.s32 1, %v47_v51 }
  0x20   :  { %v688_v39 = vld [vmem:[%s890_s5] sm:$0xff]   ;;  %610 = vmatprep.subr.bf16.mxu0 %v687_v38  ;;  %v690_v41 = vld [vmem:[%s890_s5 + $0x8] sm:$0xff]   ;;  %v691_v42 = vld [vmem:[%s890_s5 + $0x50] sm:$0xff]  }
  0x21   :  { %611 = vmatpush3.bf16.msra.mxu0 %v688_v39  ;;  %v692_v43 = vld [vmem:[%s890_s5 + $0x10] sm:$0xff]   ;;  %v693_v44 = vld [vmem:[%s890_s5 + $0x58] sm:$0xff]   ;;  %v695_v46 = vld [vmem:[%s890_s5 + $0x60] sm:$0xff]  }
  0x22   :  { %328 = vmatpush1.bf16.msra.mxu1 %v650_v13  ;;  %612 = vmatprep.subr.bf16.mxu0 %v689_v40  ;;  %v694_v45 = vld [vmem:[%s890_s5 + $0x18] sm:$0xff]   ;;  %v696_v47 = vld [vmem:[%s890_s5 + $0x20] sm:$0xff]   ;;  %v697_v48 = vld [vmem:[%s890_s5 + $0x68] sm:$0xff]  }
  0x23   :  { %329 = vmatprep.subr.bf16.mxu1 %v651_v14  ;;  %v698_v49 = vld [vmem:[%s890_s5 + $0x28] sm:$0xff]   ;;  %v44_v53 = vld [vmem:[%s887_s2] sm:$0x3]  ;;  %v699_v3 = vld [vmem:[%s890_s5 + $0x70] sm:$0xff]  }
  0x24   :  { %v49_v55 = vrot.slane %v44_v53, %v48_v52  ;;  %v53_v56 = vrot.slane %v44_v53, %v52_v54  ;;  %v700_v4 = vld [vmem:[%s890_s5 + $0x30] sm:$0xff]   ;;  %v701_v5 = vld [vmem:[%s890_s5 + $0x78] sm:$0xff]   ;;  %v149_v7 = vld [vmem:[%s889_s4] sm:$0x3]  ;;  %s755_s4 = smov [#allocation5]  }
  0x25   :  { %613 = vmatpush3.bf16.msra.mxu0 %v690_v41  ;;  %v702_v6 = vld [vmem:[%s890_s5 + $0x38] sm:$0xff]   ;;  %v154_v8 = vrot.slane %v149_v7, %v48_v52  ;;  %v158_v9 = vrot.slane %v149_v7, %v52_v54  ;;  %s548_s26 = sshll.u32 %s755_s4, 4  ;;  %s549_s26 = int_to_ptr.vmem [resolvable:$true] %s548_s26 }
  0x26   :  { %330 = vmatpush1.bf16.msra.mxu1 %v653_v15  ;;  %614 = vmatprep.subr.bf16.mxu0 %v691_v42  ;;  %s725_s27 = scalar_lea.vmem %s549_s26, 128  ;;  %p730_p9 = scmp.lt.s32.totalorder %s549_s26, %s549_s26 }
  0x27   :  { %331 = vmatprep.subr.bf16.mxu1 %v654_v16  ;;  %p726_p8 = scmp.ne.s32.totalorder %s549_s26, %s725_s27  ;;  %p731_p10 = scmp.lt.s32.totalorder %s725_s27, %s725_s27 }
  0x29   :  { %615 = vmatpush3.bf16.msra.mxu0 %v692_v43  ;;  %p732_p11 = por %p731_p10, %p730_p9 }
  0x2a   :  { %332 = vmatpush1.bf16.msra.mxu1 %v656_v17  ;;  %616 = vmatprep.subr.bf16.mxu0 %v693_v44 }
  0x2b   :  { %333 = vmatprep.subr.bf16.mxu1 %v657_v18  ;;  %p733_p12 = pnand %p732_p11, %p726_p8 }
  0x2d   :  { %617 = vmatpush3.bf16.msra.mxu0 %v694_v45 }
  0x2e   :  { %334 = vmatpush1.bf16.msra.mxu1 %v659_v19  ;;  %618 = vmatprep.subr.bf16.mxu0 %v695_v46 }
  0x2f   :  { %335 = vmatprep.subr.bf16.mxu1 %v660_v20 }
  0x31   :  { %619 = vmatpush3.bf16.msra.mxu0 %v696_v47 }
  0x32   :  { %336 = vmatpush1.bf16.msra.mxu1 %v662_v21  ;;  %620 = vmatprep.subr.bf16.mxu0 %v697_v48  ;;  %v593_v21 = vld [vmem:[%s891_s6] ss:$0 sm:$0xff] }
  0x33   :  { %337 = vmatprep.subr.bf16.mxu1 %v663_v22 }
  0x35   :  { %621 = vmatpush3.bf16.msra.mxu0 %v698_v49 }
  0x36   :  { %338 = vmatpush1.bf16.msra.mxu1 %v665_v23  ;;  %622 = vmatprep.subr.bf16.mxu0 %v699_v3 }
  0x37   :  { %339 = vmatprep.subr.bf16.mxu1 %v666_v24 }
  0x39   :  { %623 = vmatpush3.bf16.msra.mxu0 %v700_v4 }
  0x3a   :  { %340 = vmatpush1.bf16.msra.mxu1 %v668_v25  ;;  %624 = vmatprep.subr.bf16.mxu0 %v701_v5 }
  0x3b   :  { %341 = vmatprep.subr.bf16.mxu1 %v669_v26 }
  0x3d   :  { %625 = vmatpush3.bf16.msra.mxu0 %v702_v6 }
  0x3e   :  { %342 = vmatpush1.bf16.msra.mxu1 %v671_v27 }
  0x3f   :  { %343 = vmatprep.subr.bf16.mxu1 %v672_v28 }
  0x42   :  { %344 = vmatpush1.bf16.msra.mxu1 %v674_v29 }
  0x43   :  { %345 = vmatprep.subr.bf16.mxu1 %v675_v30 }
  0x46   :  { %346 = vmatpush1.bf16.msra.mxu1 %v677_v31 }
  0x47   :  { %347 = vmatprep.subr.bf16.mxu1 %v678_v32 }
  0x4a   :  { %348 = vmatpush1.bf16.msra.mxu1 %v680_v33 }
  0x4b   :  { %349 = vmatprep.subr.bf16.mxu1 %v681_v34 }
  0x4e   :  { %350 = vmatpush1.bf16.msra.mxu1 %v683_v35 }
  0x4f   :  { %351 = vmatprep.subr.bf16.mxu1 %v684_v36 }
  0x52   :  { %352 = vmatpush1.bf16.msra.mxu1 %v686_v37 }
  0xed   :  { %v106_v57 = vpop.f32.mrb[0].mxu0 }
  0xee   :  { %v107_v58 = vadd.f32 %v106_v57, %v49_v55  ;;  %v108_v59 = vpop.f32.mrb[1].mxu0 }
  0xef   :  { %v109_v60 = vadd.f32 %v108_v59, %v53_v56  ;;  %v110_v61 = vpop.f32.mrb[2].mxu0 }
  0xf0   :  { %v113_v62 = vmax.f32 %v107_v58, 0.0  ;;  %v111_v63 = vpop.f32.mrb[3].mxu0 }
  0xf1   :  { %v114_v0 = vmax.f32 %v109_v60, 0.0 }
  0xf2   :  { %v115_v2 = vpack.c.bf16 %v113_v62, %v113_v62 }
  0xf3   :  { %v116_v1 = vpack.c.bf16 %v114_v0, %v114_v0 }
  0xf5   :  { %353 = vmatprep.mubr.bf16.mxu1 %v116_v1 }
  0xf6   :  { %354 = vmatmul.mubr.bf16.vlgmr.msra.gmra.mrb[0].mxu1 %v115_v2 }
 0x1c9   :  { %v355_v10 = vpop.f32.mrb[0].mxu1 }
 0x1ca   :  { %v356_v11 = vadd.f32 %v355_v10, %v154_v8  ;;  %v357_v12 = vpop.f32.mrb[1].mxu1 }
 0x1cb   :  { %v358_v13 = vadd.f32 %v357_v12, %v158_v9  ;;  %v359_v14 = vpop.f32.mrb[2].mxu1 }
 0x1cc   :  { %v362_v15 = vmax.f32 %v356_v11, 0.0  ;;  %v360_v16 = vpop.f32.mrb[3].mxu1 }
 0x1cd   :  { %v363_v17 = vmax.f32 %v358_v13, 0.0 }
 0x1ce   :  { %v364_v19 = vpack.c.bf16 %v362_v15, %v362_v15 }
 0x1cf   :  { %v365_v18 = vpack.c.bf16 %v363_v17, %v363_v17 }
 0x1d1   :  { %533 = vmatprep.mubr.bf16.mxu0 %v365_v18 }
 0x1d2   :  { %534 = vmatmul.mubr.bf16.vlgmr.msra.gmra.mrb[4].mxu0 %v364_v19 }
 0x2a5   :  { %v626_v20 = vpop.f32.mrb[4].mxu0 }
 0x2a6   :  { %v627_v22 = vpop.f32.mrb[5].mxu0 }
 0x2a7   :  { %v628_v23 = vadd.f32 %v627_v22, %v626_v20  ;;  %v629_v24 = vpop.f32.mrb[6].mxu0 }
 0x2a8   :  { %v630_v25 = vpop.f32.mrb[7].mxu0 }
 0x2a9   :  { %v536_v26 = vadd.f32 %v628_v23, %v593_v21 }
 0x2ab   :  { %541 = vst.msk [vmem:[#allocation5] sm:$0xff] %vm61_vm1, %v536_v26 }
 0x2ac   :  { %736 = shalt.err (!%p733_p12)
}
 0x2ad   :  { %s737_s6 = scalar_lea.hbm %s892_s7, 128 }
 0x2ae   :  { %p738_p13 = scmp.ne.s32.totalorder %s892_s7, %s737_s6  ;;  %p741_p0 = scmp.lt.u32.totalorder %s737_s6, %s892_s7 }
 0x2b0   :  { %p743_p1 = pnand %p741_p0, %p738_p13 }
 0x2b2   :  { %746 = shalt.err (!%p743_p1)
}
 0x2b3   :  { %551 = dma.vmem_to_hbm [thread:$0]  %s549_s26, 128, %s892_s7, [#allocation4]  }
 0x2b4   :  { %749 = dma.done.wait [#allocation4], 128  }
 0x2b5   :  { %750 = vsyncadd [#allocation4], 4294967168 }
 0x2b6   :  { %555 = vsyncpa [#allocation3], 1 }
 0x2b7   :  { %556 = vsyncpa [#allocation4], 1 }

</bundles_post_ra>
